<compile_context>
chip_gen: v7x
topology: tpu7x:2x2x1
jax: 0.10.0
libtpu: 0.0.40
codegen_flags: <defaults>
</compile_context>

<pallas_src>
import jax
import jax.numpy as jnp
from jax.experimental import pallas as pl
from jax.experimental.pallas import tpu as pltpu


HIDDEN = 64


def _round_up(x, m):
    return ((x + m - 1) // m) * m


def _critic_kernel(x_ref, w1_ref, b1_ref, w2_ref, b2_ref, w3_ref, b3_ref, o_ref):
    # x_ref: (state_dim, TB)  -- batch on the lane axis
    x_bf = x_ref[...].astype(jnp.bfloat16)
    w1_bf = w1_ref[...].astype(jnp.bfloat16)          # (H, state_dim)

    # Layer 1: Linear(state_dim -> 64) + ReLU   (MXU, bf16 operands, f32 acc)
    h1 = jnp.dot(w1_bf, x_bf, preferred_element_type=jnp.float32)   # (H, TB)
    h1 = jnp.maximum(h1 + b1_ref[...], 0.0)

    # Layer 2: Linear(64 -> 64) + ReLU
    w2_bf = w2_ref[...].astype(jnp.bfloat16)          # (H, H)
    h2 = jnp.dot(w2_bf, h1.astype(jnp.bfloat16),
                 preferred_element_type=jnp.float32)                 # (H, TB)
    h2 = jnp.maximum(h2 + b2_ref[...], 0.0)

    # Layer 3: Linear(64 -> 1). N=1 matmul wastes the MXU; do a VPU multiply
    # + cross-sublane reduce (XLU) instead. w3_ref is (H, 1), b3 is SMEM scalar.
    v = jnp.sum(h2 * w3_ref[...], axis=0, keepdims=True) + b3_ref[0]  # (1, TB)
    o_ref[...] = v.astype(o_ref.dtype)


def critic_forward(state, params):
    """Critic MLP forward pass as a single batch-tiled Pallas TPU kernel.

    state: (B, state_dim) float32
    params: dict with (PyTorch-layout) w1 (64, state_dim), b1 (64, 1),
            w2 (64, 64), b2 (64, 1), w3 (1, 64), b3 (1,)
    returns: (B, 1) float32 value estimates
    """
    B, state_dim = state.shape
    hidden = params["w1"].shape[0]

    # Lane tile over the batch: multiple of 128 lanes, capped at 1024 rows.
    TB = min(1024, _round_up(max(B, 1), 128))
    num_tiles = pl.cdiv(B, TB)
    B_pad = num_tiles * TB

    # Feature-major (transposed) input, zero-padded on the batch/lane axis.
    x_t = jnp.zeros((state_dim, B_pad), jnp.float32).at[:, :B].set(state.T)

    w3_col = params["w3"].reshape(hidden, 1)   # (H, 1) column for the VPU reduce

    out = pl.pallas_call(
        _critic_kernel,
        out_shape=jax.ShapeDtypeStruct((1, B_pad), jnp.float32),
        grid=(num_tiles,),
        in_specs=[
            # batch-tiled input (lane-dense loads)
            pl.BlockSpec((state_dim, TB), lambda i: (0, i)),
            # weights / biases: resident in VMEM across the whole grid
            pl.BlockSpec((hidden, state_dim), lambda i: (0, 0)),
            pl.BlockSpec((hidden, 1), lambda i: (0, 0)),
            pl.BlockSpec((hidden, hidden), lambda i: (0, 0)),
            pl.BlockSpec((hidden, 1), lambda i: (0, 0)),
            pl.BlockSpec((hidden, 1), lambda i: (0, 0)),
            # scalar output bias in SMEM
            pl.BlockSpec(memory_space=pltpu.MemorySpace.SMEM),
        ],
        # lane-dense output slab (unmasked wide stores)
        out_specs=pl.BlockSpec((1, TB), lambda i: (0, i)),
        compiler_params=pltpu.CompilerParams(
            dimension_semantics=("parallel",),      # megacore sharding on v7x
            vmem_limit_bytes=32 * 1024 * 1024,
        ),
    )(x_t, params["w1"], params["b1"], params["w2"], params["b2"], w3_col,
      params["b3"])

    # (1, B_pad) -> (B, 1), dropping batch padding; order preserved.
    return out.reshape(B_pad, 1)[:B]


def init_critic_params(key, state_dim, hidden=HIDDEN):
    """PyTorch default Linear init (uniform +/- 1/sqrt(fan_in)), stored in
    PyTorch (out_features, in_features) layout; biases as columns."""
    ks = jax.random.split(key, 6)

    def uinit(k, shape, fan_in):
        bound = 1.0 / jnp.sqrt(jnp.float32(fan_in))
        return jax.random.uniform(k, shape, jnp.float32, -bound, bound)

    return {
        "w1": uinit(ks[0], (hidden, state_dim), state_dim),
        "b1": uinit(ks[1], (hidden, 1), state_dim),
        "w2": uinit(ks[2], (hidden, hidden), hidden),
        "b2": uinit(ks[3], (hidden, 1), hidden),
        "w3": uinit(ks[4], (1, hidden), hidden),
        "b3": uinit(ks[5], (1,), hidden),
    }


def critic_reference(state, params):
    """Pure-JAX reference mirroring the kernel's bf16-operand / f32-accumulate
    numerics (batch-major formulation)."""
    x = state.astype(jnp.bfloat16)
    w1 = params["w1"].astype(jnp.bfloat16)
    h1 = jnp.maximum(
        jnp.dot(x, w1.T, preferred_element_type=jnp.float32) + params["b1"].T, 0.0)
    w2 = params["w2"].astype(jnp.bfloat16)
    h2 = jnp.maximum(
        jnp.dot(h1.astype(jnp.bfloat16), w2.T,
                preferred_element_type=jnp.float32) + params["b2"].T, 0.0)
    return h2 @ params["w3"].T + params["b3"]   # (B, 1)


if __name__ == "__main__":
    key = jax.random.PRNGKey(0)
    k_state, k_params = jax.random.split(key)

    batch, state_dim = 8, 16
    state = jax.random.normal(k_state, (batch, state_dim), jnp.float32)
    params = init_critic_params(k_params, state_dim)

    out = jax.block_until_ready(critic_forward(state, params))
    ref = critic_reference(state, params)

    assert out.shape == (batch, 1)
    assert jnp.allclose(out, ref, atol=1e-2, rtol=1e-2), "mismatch vs JAX reference"

    print("KERNEL_OK")
</pallas_src>

<mosaic_0001>
module attributes {stable_mosaic.version = 11 : i64} {
  func.func @_critic_kernel(%arg0: i32, %arg1: memref<16x128xf32, #tpu.memory_space<vmem>>, %arg2: memref<64x16xf32, #tpu.memory_space<vmem>>, %arg3: memref<64x1xf32, #tpu.memory_space<vmem>>, %arg4: memref<64x64xf32, #tpu.memory_space<vmem>>, %arg5: memref<64x1xf32, #tpu.memory_space<vmem>>, %arg6: memref<64x1xf32, #tpu.memory_space<vmem>>, %arg7: memref<1xf32, #tpu.memory_space<smem>>, %arg8: memref<1x128xf32, #tpu.memory_space<vmem>>) attributes {dimension_semantics = [#tpu.dimension_semantics<parallel>], iteration_bounds = array<i64: 1>, scalar_prefetch = 0 : i64, scratch_operands = 0 : i64, tpu.core_type = #tpu.core_type<tc>, window_params = [{transform_indices = @transform_0, window_bounds = array<i64: 16, 128>}, {pipeline_mode = #tpu.pipeline_mode<synchronous>, transform_indices = @transform_1, window_bounds = array<i64: 64, 16>}, {pipeline_mode = #tpu.pipeline_mode<synchronous>, transform_indices = @transform_2, window_bounds = array<i64: 64, 1>}, {pipeline_mode = #tpu.pipeline_mode<synchronous>, transform_indices = @transform_3, window_bounds = array<i64: 64, 64>}, {pipeline_mode = #tpu.pipeline_mode<synchronous>, transform_indices = @transform_4, window_bounds = array<i64: 64, 1>}, {pipeline_mode = #tpu.pipeline_mode<synchronous>, transform_indices = @transform_5, window_bounds = array<i64: 64, 1>}, {transform_indices = @transform_6, window_bounds = array<i64: 1>}, {transform_indices = @transform_7, window_bounds = array<i64: 1, 128>}]} {
    %c0 = arith.constant 0 : index
    %c0_0 = arith.constant 0 : index
    %0 = vector.load %arg1[%c0, %c0_0] : memref<16x128xf32, #tpu.memory_space<vmem>>, vector<16x128xf32>
    %1 = arith.truncf %0 : vector<16x128xf32> to vector<16x128xbf16>
    %c0_1 = arith.constant 0 : index
    %c0_2 = arith.constant 0 : index
    %2 = vector.load %arg2[%c0_1, %c0_2] : memref<64x16xf32, #tpu.memory_space<vmem>>, vector<64x16xf32>
    %3 = arith.truncf %2 : vector<64x16xf32> to vector<64x16xbf16>
    %cst = arith.constant dense<0.000000e+00> : vector<64x128xf32>
    %4 = tpu.matmul %3, %1, %cst {dimension_numbers = #tpu.dot_dimension_numbers<[1], [0], [0], [1], [0, 0, 1, 1], [], []>} : vector<64x16xbf16>, vector<16x128xbf16>, vector<64x128xf32> -> vector<64x128xf32>
    %c0_3 = arith.constant 0 : index
    %c0_4 = arith.constant 0 : index
    %5 = vector.load %arg3[%c0_3, %c0_4] : memref<64x1xf32, #tpu.memory_space<vmem>>, vector<64x1xf32>
    %6 = vector.broadcast %5 : vector<64x1xf32> to vector<64x128xf32>
    %7 = arith.addf %4, %6 : vector<64x128xf32>
    %cst_5 = arith.constant 0.000000e+00 : f32
    %8 = vector.broadcast %cst_5 : f32 to vector<64x128xf32>
    %9 = arith.maximumf %7, %8 : vector<64x128xf32>
    %c0_6 = arith.constant 0 : index
    %c0_7 = arith.constant 0 : index
    %10 = vector.load %arg4[%c0_6, %c0_7] : memref<64x64xf32, #tpu.memory_space<vmem>>, vector<64x64xf32>
    %11 = arith.truncf %10 : vector<64x64xf32> to vector<64x64xbf16>
    %12 = arith.truncf %9 : vector<64x128xf32> to vector<64x128xbf16>
    %cst_8 = arith.constant dense<0.000000e+00> : vector<64x128xf32>
    %13 = tpu.matmul %11, %12, %cst_8 {dimension_numbers = #tpu.dot_dimension_numbers<[1], [0], [0], [1], [0, 0, 1, 1], [], []>} : vector<64x64xbf16>, vector<64x128xbf16>, vector<64x128xf32> -> vector<64x128xf32>
    %c0_9 = arith.constant 0 : index
    %c0_10 = arith.constant 0 : index
    %14 = vector.load %arg5[%c0_9, %c0_10] : memref<64x1xf32, #tpu.memory_space<vmem>>, vector<64x1xf32>
    %15 = vector.broadcast %14 : vector<64x1xf32> to vector<64x128xf32>
    %16 = arith.addf %13, %15 : vector<64x128xf32>
    %cst_11 = arith.constant 0.000000e+00 : f32
    %17 = vector.broadcast %cst_11 : f32 to vector<64x128xf32>
    %18 = arith.maximumf %16, %17 : vector<64x128xf32>
    %c0_12 = arith.constant 0 : index
    %c0_13 = arith.constant 0 : index
    %19 = vector.load %arg6[%c0_12, %c0_13] : memref<64x1xf32, #tpu.memory_space<vmem>>, vector<64x1xf32>
    %20 = vector.broadcast %19 : vector<64x1xf32> to vector<64x128xf32>
    %21 = arith.mulf %18, %20 : vector<64x128xf32>
    %cst_14 = arith.constant dense<0.000000e+00> : vector<128xf32>
    %22 = vector.multi_reduction <add>, %21, %cst_14 [0] : vector<64x128xf32> to vector<128xf32>
    %23 = vector.shape_cast %22 : vector<128xf32> to vector<1x128xf32>
    %c0_15 = arith.constant 0 : index
    %24 = memref.load %arg7[%c0_15] : memref<1xf32, #tpu.memory_space<smem>>
    %25 = vector.broadcast %24 : f32 to vector<1x128xf32>
    %26 = arith.addf %23, %25 : vector<1x128xf32>
    %c0_16 = arith.constant 0 : index
    %c0_17 = arith.constant 0 : index
    %27 = vector.load %arg8[%c0_16, %c0_17] : memref<1x128xf32, #tpu.memory_space<vmem>>, vector<1x128xf32>
    tpu.vector_store %arg8[%c0_16, %c0_17], %26 {strides = array<i32>} : memref<1x128xf32, #tpu.memory_space<vmem>>, vector<1x128xf32>,
    return
  }
  func.func @transform_0(%arg0: i32) -> (i32, i32) {
    %c0_i32 = arith.constant 0 : i32
    %c0_i32_0 = arith.constant 0 : i32
    return %c0_i32, %arg0 : i32, i32
  }
  func.func @transform_1(%arg0: i32) -> (i32, i32) {
    %c0_i32 = arith.constant 0 : i32
    %c0_i32_0 = arith.constant 0 : i32
    %c0_i32_1 = arith.constant 0 : i32
    return %c0_i32, %c0_i32_0 : i32, i32
  }
  func.func @transform_2(%arg0: i32) -> (i32, i32) {
    %c0_i32 = arith.constant 0 : i32
    %c0_i32_0 = arith.constant 0 : i32
    %c0_i32_1 = arith.constant 0 : i32
    return %c0_i32, %c0_i32_0 : i32, i32
  }
  func.func @transform_3(%arg0: i32) -> (i32, i32) {
    %c0_i32 = arith.constant 0 : i32
    %c0_i32_0 = arith.constant 0 : i32
    %c0_i32_1 = arith.constant 0 : i32
    return %c0_i32, %c0_i32_0 : i32, i32
  }
  func.func @transform_4(%arg0: i32) -> (i32, i32) {
    %c0_i32 = arith.constant 0 : i32
    %c0_i32_0 = arith.constant 0 : i32
    %c0_i32_1 = arith.constant 0 : i32
    return %c0_i32, %c0_i32_0 : i32, i32
  }
  func.func @transform_5(%arg0: i32) -> (i32, i32) {
    %c0_i32 = arith.constant 0 : i32
    %c0_i32_0 = arith.constant 0 : i32
    %c0_i32_1 = arith.constant 0 : i32
    return %c0_i32, %c0_i32_0 : i32, i32
  }
  func.func @transform_6(%arg0: i32) -> i32 {
    %c0_i32 = arith.constant 0 : i32
    %c0_i32_0 = arith.constant 0 : i32
    return %c0_i32 : i32
  }
  func.func @transform_7(%arg0: i32) -> (i32, i32) {
    %c0_i32 = arith.constant 0 : i32
    %c0_i32_0 = arith.constant 0 : i32
    return %c0_i32, %arg0 : i32, i32
  }
}

</mosaic_0001>

<bundles_post_ra>
// kernel: tpu_custom_call.1
= control target key start
LH: loop header
LB: loop body
LE: loop exit
PB: predicated region body
PF: predicated region fallthrough
CT: control target
= control target key end

     0   :  { %vm92_vm0 = vcmask 130048   ;;  %v498_v7 = vmov 0   ;;  %s689_s0 = inlined_call_operand.vmem [shape: f32[16,128], index: 0, kind: input, shape index: {}]   ;;  %s690_s1 = inlined_call_operand.vmem [shape: f32[64,16], index: 1, kind: input, shape index: {}]   ;;  %s691_s2 = inlined_call_operand.vmem [shape: f32[64,1], index: 2, kind: input, shape index: {}]   ;;  %s692_s3 = inlined_call_operand.vmem [shape: f32[64,64], index: 3, kind: input, shape index: {}]   ;;  %s693_s4 = inlined_call_operand.vmem [shape: f32[64,1], index: 4, kind: input, shape index: {}]   ;;  %s694_s5 = inlined_call_operand.vmem [shape: f32[64,1], index: 5, kind: input, shape index: {}]   ;;  %s695_s6 = inlined_call_operand.<no memory space> [shape: f32[1], index: 6, kind: input, shape index: {}]   ;;  %s696_s7 = inlined_call_operand.hbm [shape: f32[1,128], index: 7, kind: output, shape index: {}]  }
   0x1   :  { %v29_v0 = vld [vmem:[%s689_s0] sm:$0xff]  ;;  %v30_v1 = vld [vmem:[%s689_s0 + $0x8] sm:$0xff]  ;;  %v34_v5 = vld [vmem:[%s690_s1 + $0x10] sm:$0xff]  ;;  %472 = vset.pattern.permute.xlu0 %v498_v7  ;;  %473 = vset.pattern.permute.xlu1 %v498_v7 }
   0x2   :  { %v32_v2 = vld [vmem:[%s690_s1] sm:$0xff]  ;;  %v31_v3 = vpack.c.bf16 %v30_v1, %v29_v0  ;;  %v33_v4 = vld [vmem:[%s690_s1 + $0x8] sm:$0xff]  ;;  %v35_v6 = vld [vmem:[%s690_s1 + $0x18] sm:$0xff] }
   0x3   :  { %v40_v8 = vpack.c.bf16 %v33_v4, %v32_v2  ;;  %v36_v9 = vld [vmem:[%s690_s1 + $0x20] sm:$0xff]  ;;  %v37_v10 = vld [vmem:[%s690_s1 + $0x28] sm:$0xff]  ;;  %v41_v11 = vpack.c.bf16 %v35_v6, %v34_v5  ;;  %v46_v13 = vld [vmem:[%s691_s2 + $0x10] sm:$0xff] }
   0x4   :  { %436 = vmatprep.subr.bf16.mxu0 %v31_v3  ;;  %v44_v12 = vld [vmem:[%s691_s2] sm:$0xff]  ;;  %v42_v14 = vpack.c.bf16 %v37_v10, %v36_v9  ;;  %64 = vperm.xlu1 %473, %v46_v13   ;;  %v45_v15 = vld [vmem:[%s691_s2 + $0x8] sm:$0xff]  ;;  %v47_v16 = vld [vmem:[%s691_s2 + $0x18] sm:$0xff] }
   0x5   :  { %437 = vmatpush3.bf16.msra.mxu0 %v31_v3  ;;  %438 = vmatprep.mubr.msk.bf16.mxu0 %vm92_vm0, %v40_v8  ;;  %v38_v17 = vld [vmem:[%s690_s1 + $0x30] sm:$0xff]  ;;  %v39_v18 = vld [vmem:[%s690_s1 + $0x38] sm:$0xff]  ;;  %v48_v19 = vld [vmem:[%s691_s2 + $0x20] sm:$0xff] }
   0x6   :  { %54 = vperm.xlu0 %472, %v44_v12   ;;  %v49_v20 = vld [vmem:[%s691_s2 + $0x28] sm:$0xff]  ;;  %v43_v21 = vpack.c.bf16 %v39_v18, %v38_v17 }
   0x8   :  { %439 = vmatmul.mubr.msk.bf16.vlgmr.msra.gmra.mrb[0].mxu0 %vm92_vm0, %v41_v11  ;;  %69 = vperm.xlu1 %473, %v47_v16  }
   0x9   :  { %442 = vmatprep.mubr.msk.bf16.mxu0 %vm92_vm0, %v42_v14 }
   0xa   :  { %59 = vperm.xlu0 %472, %v45_v15  }
   0xb   :  { %13 = vsyncpa [#allocation4], 0  ;;  %v50_v22 = vld [vmem:[%s691_s2 + $0x30] sm:$0xff]  ;;  %v51_v23 = vld [vmem:[%s691_s2 + $0x38] sm:$0xff]  ;;  %vm242_vm1 = vcmask 523264   ;;  %s499_s8 = smov [#allocation3]  }
   0xc   :  { %79 = vperm.xlu1 %473, %v49_v20   ;;  %v194_v24 = vld [vmem:[%s693_s4] sm:$0xff]  ;;  %v195_v25 = vld [vmem:[%s693_s4 + $0x8] sm:$0xff]  ;;  %v196_v26 = vld [vmem:[%s693_s4 + $0x10] sm:$0xff]  ;;  %s407_s9 = sshll.u32 %s499_s8, 4  ;;  %s408_s9 = int_to_ptr.vmem [resolvable:$true] %s407_s9 }
   0xd   :  { %v197_v27 = vld [vmem:[%s693_s4 + $0x18] sm:$0xff]  ;;  %v328_v28 = vld [vmem:[%s694_s5] sm:$0xff]  ;;  %v329_v29 = vld [vmem:[%s694_s5 + $0x8] sm:$0xff]  ;;  %s474_s10 = scalar_lea.vmem %s408_s9, 16  ;;  %s478_s11 = scalar_lea.vmem %s408_s9, 32 }
   0xe   :  { %74 = vperm.xlu0 %472, %v48_v19   ;;  %v198_v30 = vld [vmem:[%s693_s4 + $0x20] sm:$0xff]  ;;  %v330_v31 = vld [vmem:[%s694_s5 + $0x10] sm:$0xff]  ;;  %v199_v32 = vld [vmem:[%s693_s4 + $0x28] sm:$0xff]  ;;  %p475_p0 = scmp.ne.s32.totalorder %s408_s9, %s474_s10  ;;  %p479_p1 = scmp.lt.s32.totalorder %s408_s9, %s408_s9 }
   0xf   :  { %v331_v33 = vld [vmem:[%s694_s5 + $0x18] sm:$0xff]  ;;  %v200_v34 = vld [vmem:[%s693_s4 + $0x30] sm:$0xff]  ;;  %v332_v35 = vld [vmem:[%s694_s5 + $0x20] sm:$0xff]  ;;  %p480_p2 = scmp.lt.s32.totalorder %s478_s11, %s474_s10 }
  0x10   :  { %443 = vmatmul.mubr.msk.bf16.gmra.mrb[4].mxu0 %vm92_vm0, %v43_v21  ;;  %89 = vperm.xlu1 %473, %v51_v23   ;;  %v201_v36 = vld [vmem:[%s693_s4 + $0x38] sm:$0xff]  ;;  %v333_v37 = vld [vmem:[%s694_s5 + $0x28] sm:$0xff]  ;;  %v334_v38 = vld [vmem:[%s694_s5 + $0x30] sm:$0xff] }
  0x11   :  { %v335_v39 = vld [vmem:[%s694_s5 + $0x38] sm:$0xff]  ;;  %v178_v40 = vld [vmem:[%s692_s3] sm:$0xff]  ;;  %v179_v41 = vld [vmem:[%s692_s3 + $0x8] sm:$0xff]  ;;  %p481_p3 = por %p480_p2, %p479_p1 }
  0x12   :  { %84 = vperm.xlu0 %472, %v50_v22   ;;  %v182_v42 = vld [vmem:[%s692_s3 + $0x20] sm:$0xff]  ;;  %v186_v43 = vpack.c.bf16 %v179_v41, %v178_v40  ;;  %v183_v44 = vld [vmem:[%s692_s3 + $0x28] sm:$0xff]  ;;  %v180_v18 = vld [vmem:[%s692_s3 + $0x10] sm:$0xff] }
  0x13   :  { %v188_v45 = vpack.c.bf16 %v183_v44, %v182_v42  ;;  %v181_v19 = vld [vmem:[%s692_s3 + $0x18] sm:$0xff]  ;;  %v184_v20 = vld [vmem:[%s692_s3 + $0x30] sm:$0xff]  ;;  %p482_p4 = pnand %p481_p3, %p475_p0 }
  0x14   :  { %209 = vperm.xlu1 %473, %v195_v25   ;;  %454 = vmatprep.mubr.msk.bf16.mxu0 %vm242_vm1, %v186_v43  ;;  %v185_v21 = vld [vmem:[%s692_s3 + $0x38] sm:$0xff]  ;;  %v187_v22 = vpack.c.bf16 %v181_v19, %v180_v18 }
  0x15   :  { %458 = vmatprep.mubr.msk.bf16.mxu1 %vm242_vm1, %v188_v45  ;;  %v189_v23 = vpack.c.bf16 %v185_v21, %v184_v20  ;;  %v398_v20 = vstv %s695_s6 }
  0x16   :  { %204 = vperm.xlu0 %472, %v194_v24  }
  0x18   :  { %219 = vperm.xlu1 %473, %v197_v27  }
  0x1a   :  { %214 = vperm.xlu0 %472, %v196_v26  }
  0x1c   :  { %343 = vperm.xlu1 %473, %v329_v29  }
  0x1e   :  { %338 = vperm.xlu0 %472, %v328_v28  }
  0x20   :  { %348 = vperm.xlu1 %473, %v330_v31  }
  0x22   :  { %224 = vperm.xlu0 %472, %v198_v30  }
  0x24   :  { %353 = vperm.xlu1 %473, %v331_v33  }
  0x26   :  { %229 = vperm.xlu0 %472, %v199_v32  }
  0x28   :  { %358 = vperm.xlu1 %473, %v332_v35  }
  0x2a   :  { %234 = vperm.xlu0 %472, %v200_v34  }
  0x2c   :  { %363 = vperm.xlu1 %473, %v333_v37  }
  0x2e   :  { %239 = vperm.xlu0 %472, %v201_v36  }
  0x30   :  { %373 = vperm.xlu1 %473, %v335_v39  }
  0x32   :  { %368 = vperm.xlu0 %472, %v334_v38  }
  0x83   :  { %v65_v47 = vpop.permute.xlu1 %64 }
  0x85   :  { %v55_v46 = vpop.permute.xlu0 %54 }
  0x87   :  { %v70_v49 = vpop.permute.xlu1 %69 }
  0x89   :  { %v60_v48 = vpop.permute.xlu0 %59 }
  0x8b   :  { %v80_v58 = vpop.permute.xlu1 %79 }
  0x8d   :  { %v75_v53 = vpop.permute.xlu0 %74 }
  0x8f   :  { %v90_v6 = vpop.permute.xlu1 %89 }
  0x91   :  { %v85_v1 = vpop.permute.xlu0 %84 }
  0x93   :  { %v210_v25 = vpop.permute.xlu1 %209 }
  0x95   :  { %v205_v24 = vpop.permute.xlu0 %204 }
  0x97   :  { %v220_v27 = vpop.permute.xlu1 %219 }
  0x99   :  { %v215_v26 = vpop.permute.xlu0 %214 }
  0x9b   :  { %v344_v29 = vpop.permute.xlu1 %343 }
  0x9d   :  { %v339_v28 = vpop.permute.xlu0 %338 }
  0x9f   :  { %v349_v31 = vpop.permute.xlu1 %348 }
  0xa1   :  { %v225_v30 = vpop.permute.xlu0 %224 }
  0xa3   :  { %v354_v33 = vpop.permute.xlu1 %353 }
  0xa5   :  { %v230_v32 = vpop.permute.xlu0 %229 }
  0xdb   :  { %v440_v50 = vpop.f32.mrb[0].mxu0 }
  0xdc   :  { %v148_v51 = vadd.f32 %v440_v50, %v65_v47  ;;  %v139_v52 = vpop.f32.mrb[1].mxu0  ;;  %v235_v47 = vpop.permute.xlu0 %234 }
  0xdd   :  { %v140_v54 = vadd.f32 %v139_v52, %v55_v46  ;;  %v441_v55 = vpop.f32.mrb[2].mxu0 }
  0xde   :  { %v151_v56 = vadd.f32 %v441_v55, %v70_v49  ;;  %v142_v57 = vpop.f32.mrb[3].mxu0  ;;  %v172_v60 = vmax.f32 %v148_v51, 0.0  ;;  %v359_v51 = vpop.permute.xlu1 %358 }
  0xdf   :  { %v143_v59 = vadd.f32 %v142_v57, %v60_v48  ;;  %v170_v62 = vmax.f32 %v140_v54, 0.0 }
  0xe0   :  { %v173_v61 = vmax.f32 %v151_v56, 0.0 }
  0xe1   :  { %v171_v63 = vmax.f32 %v143_v59, 0.0 }
  0xe2   :  { %v191_v0 = vpack.c.bf16 %v173_v61, %v172_v60  ;;  %v240_v60 = vpop.permute.xlu0 %239 }
  0xe3   :  { %v190_v2 = vpack.c.bf16 %v171_v63, %v170_v62  ;;  %v444_v3 = vpop.f32.mrb[4].mxu0 }
  0xe4   :  { %v164_v4 = vadd.f32 %v444_v3, %v85_v1  ;;  %v155_v5 = vpop.f32.mrb[5].mxu0  ;;  %v364_v1 = vpop.permute.xlu1 %363 }
  0xe5   :  { %v156_v7 = vadd.f32 %v155_v5, %v75_v53  ;;  %v445_v8 = vpop.f32.mrb[6].mxu0  ;;  %446 = vmatprep.subr.bf16.mxu0 %v190_v2  ;;  %462 = vmatprep.subr.bf16.mxu1 %v190_v2 }
  0xe6   :  { %v167_v9 = vadd.f32 %v445_v8, %v90_v6  ;;  %v158_v10 = vpop.f32.mrb[7].mxu0  ;;  %447 = vmatpush3.bf16.msra.mxu0 %v190_v2  ;;  %466 = vmatpush3.bf16.msra.mxu1 %v190_v2  ;;  %v176_v12 = vmax.f32 %v164_v4, 0.0  ;;  %v369_v8 = vpop.permute.xlu0 %368 }
  0xe7   :  { %v159_v11 = vadd.f32 %v158_v10, %v80_v58  ;;  %448 = vmatprep.subr.bf16.mxu0 %v191_v0  ;;  %463 = vmatprep.subr.bf16.mxu1 %v191_v0  ;;  %v174_v14 = vmax.f32 %v156_v7, 0.0 }
  0xe8   :  { %v177_v13 = vmax.f32 %v167_v9, 0.0 }
  0xe9   :  { %v175_v15 = vmax.f32 %v159_v11, 0.0  ;;  %v374_v11 = vpop.permute.xlu1 %373 }
  0xea   :  { %v193_v16 = vpack.c.bf16 %v177_v13, %v176_v12  ;;  %449 = vmatpush3.bf16.msra.mxu0 %v191_v0  ;;  %467 = vmatpush3.bf16.msra.mxu1 %v191_v0 }
  0xeb   :  { %v192_v17 = vpack.c.bf16 %v175_v15, %v174_v14 }
  0xed   :  { %450 = vmatprep.subr.bf16.mxu0 %v192_v17  ;;  %464 = vmatprep.subr.bf16.mxu1 %v192_v17 }
  0xee   :  { %451 = vmatpush3.bf16.msra.mxu0 %v192_v17  ;;  %468 = vmatpush3.bf16.msra.mxu1 %v192_v17 }
  0xef   :  { %452 = vmatprep.subr.bf16.mxu0 %v193_v16  ;;  %465 = vmatprep.subr.bf16.mxu1 %v193_v16 }
  0xf2   :  { %453 = vmatpush3.bf16.msra.mxu0 %v193_v16  ;;  %469 = vmatpush3.bf16.msra.mxu1 %v193_v16 }
  0xf5   :  { %455 = vmatmul.mubr.msk.bf16.vlgmr.msra.gmra.mrb[8].mxu0 %vm242_vm1, %v187_v22  ;;  %459 = vmatmul.mubr.msk.bf16.vlgmr.msra.gmra.mrb[0].mxu1 %vm242_vm1, %v189_v23 }
 0x1c8   :  { %v456_v34 = vpop.f32.mrb[8].mxu0  ;;  %v460_v35 = vpop.f32.mrb[0].mxu1 }
 0x1c9   :  { %v289_v36 = vpop.f32.mrb[9].mxu0  ;;  %v305_v37 = vpop.f32.mrb[1].mxu1  ;;  %v298_v38 = vadd.f32 %v456_v34, %v215_v26  ;;  %v314_v57 = vadd.f32 %v460_v35, %v235_v47 }
 0x1ca   :  { %v290_v39 = vadd.f32 %v289_v36, %v205_v24  ;;  %v457_v40 = vpop.f32.mrb[10].mxu0  ;;  %v461_v41 = vpop.f32.mrb[2].mxu1  ;;  %v306_v49 = vadd.f32 %v305_v37, %v225_v30 }
 0x1cb   :  { %v292_v42 = vpop.f32.mrb[11].mxu0  ;;  %v308_v43 = vpop.f32.mrb[3].mxu1  ;;  %v301_v45 = vadd.f32 %v457_v40, %v220_v27  ;;  %v322_v48 = vmax.f32 %v298_v38, 0.0  ;;  %v317_v62 = vadd.f32 %v461_v41, %v240_v60  ;;  %v326_v2 = vmax.f32 %v314_v57, 0.0 }
 0x1cc   :  { %v320_v44 = vmax.f32 %v290_v39, 0.0  ;;  %v293_v46 = vadd.f32 %v292_v42, %v210_v25  ;;  %v309_v55 = vadd.f32 %v308_v43, %v230_v32  ;;  %v324_v58 = vmax.f32 %v306_v49, 0.0 }
 0x1cd   :  { %v323_v53 = vmax.f32 %v301_v45, 0.0  ;;  %v378_v56 = vmul.f32 %v349_v31, %v322_v48  ;;  %v327_v5 = vmax.f32 %v317_v62, 0.0  ;;  %v382_v9 = vmul.f32 %v369_v8, %v326_v2 }
 0x1ce   :  { %v321_v50 = vmax.f32 %v293_v46, 0.0  ;;  %v376_v52 = vmul.f32 %v339_v28, %v320_v44  ;;  %v325_v0 = vmax.f32 %v309_v55, 0.0  ;;  %v380_v3 = vmul.f32 %v359_v51, %v324_v58 }
 0x1cf   :  { %v379_v61 = vmul.f32 %v354_v33, %v323_v53  ;;  %v383_v12 = vmul.f32 %v374_v11, %v327_v5 }
 0x1d0   :  { %v377_v54 = vmul.f32 %v344_v29, %v321_v50  ;;  %v381_v6 = vmul.f32 %v364_v1, %v325_v0 }
 0x1d2   :  { %v384_v59 = vadd.f32 %v377_v54, %v376_v52 }
 0x1d4   :  { %v385_v63 = vadd.f32 %v384_v59, %v378_v56 }
 0x1d6   :  { %v386_v4 = vadd.f32 %v385_v63, %v379_v61 }
 0x1d8   :  { %v387_v7 = vadd.f32 %v386_v4, %v380_v3 }
 0x1da   :  { %v388_v10 = vadd.f32 %v387_v7, %v381_v6 }
 0x1dc   :  { %v389_v13 = vadd.f32 %v388_v10, %v382_v9 }
 0x1de   :  { %v390_v14 = vadd.f32 %v389_v13, %v383_v12 }
 0x1e0   :  { %v391_v15 = vrot.slane %v390_v14, 4 }
 0x1e2   :  { %v392_v16 = vadd.f32 %v391_v15, %v390_v14 }
 0x1e4   :  { %v393_v17 = vrot.slane %v392_v16, 2 }
 0x1e6   :  { %v394_v18 = vadd.f32 %v393_v17, %v392_v16 }
 0x1e8   :  { %v395_v19 = vrot.slane %v394_v18, 1 }
 0x1ea   :  { %v396_v21 = vadd.f32 %v395_v19, %v394_v18 }
 0x1ec   :  { %v399_v22 = vadd.f32 %v398_v20, %v396_v21 }
 0x1ee   :  { %400 = vst [vmem:[#allocation3] sm:$0x1] %v399_v22 }
 0x1ef   :  { %485 = shalt.err (!%p482_p4)
}
 0x1f0   :  { %s486_s0 = scalar_lea.hbm %s696_s7, 16 }
 0x1f1   :  { %p487_p5 = scmp.ne.s32.totalorder %s696_s7, %s486_s0  ;;  %p490_p6 = scmp.lt.u32.totalorder %s486_s0, %s696_s7 }
 0x1f3   :  { %p492_p7 = pnand %p490_p6, %p487_p5 }
 0x1f5   :  { %495 = shalt.err (!%p492_p7)
}
 0x1f6   :  { %410 = dma.vmem_to_hbm [thread:$0]  %s408_s9, 16, %s696_s7, [#allocation4]  }
 0x1f7   :  { %496 = dma.done.wait [#allocation4], 16  }
 0x1f8   :  { %497 = vsyncadd [#allocation4], 4294967280 }
 0x1f9   :  { %414 = vsyncpa [#allocation4], 1 }

</bundles_post_ra>
